<compile_context>
chip_gen: v7x
topology: tpu7x:2x2x1
jax: 0.10.0
libtpu: 0.0.40
codegen_flags: <defaults>
</compile_context>

<pallas_src>
import functools

import jax
import jax.numpy as jnp
import numpy as np
from jax.experimental import pallas as pl
from jax.experimental.pallas import tpu as pltpu

_F32_EPS = float(jnp.finfo(jnp.float32).eps)   # == torch.finfo(float32).eps


# ----------------------------------------------------------------------------
# Pallas kernel: fully fused SmoothReg forward for one batch element.
# ----------------------------------------------------------------------------
def _smooth_reg_kernel(disp_ref, img_ref, dgrad_ref, igrad_ref, loss_ref, *,
                       use_edges, use_laplacian, num_ch):
    _, _, h, w = dgrad_ref.shape
    f32 = jnp.float32

    # Boundary masks (last column / last row of each gradient map is zero).
    col = jax.lax.broadcasted_iota(jnp.int32, (h, w), 1)
    row = jax.lax.broadcasted_iota(jnp.int32, (h, w), 0)
    col_mask = col < (w - 1)
    row_mask = row < (h - 1)

    # Sub-diagonal shift matrices: (x @ sx)[:, j] == x[:, j+1] (0 at j = w-1),
    # (sy @ x)[i, :] == x[i+1, :] (0 at i = h-1).  Shift-via-MXU keeps all
    # intermediates at full (h, w) shape (no unaligned lane concat/rotate).
    sx = jnp.where(
        jax.lax.broadcasted_iota(jnp.int32, (w, w), 0)
        == jax.lax.broadcasted_iota(jnp.int32, (w, w), 1) + 1, 1.0, 0.0)
    sy = jnp.where(
        jax.lax.broadcasted_iota(jnp.int32, (h, h), 1)
        == jax.lax.broadcasted_iota(jnp.int32, (h, h), 0) + 1, 1.0, 0.0)

    def grad_x(x):   # |x[:, j] - x[:, j+1]|, zero in the last column
        nbr = jnp.dot(x, sx, preferred_element_type=f32)
        return jnp.where(col_mask, jnp.abs(x - nbr), 0.0)

    def grad_y(x):   # |x[i, :] - x[i+1, :]|, zero in the last row
        nbr = jnp.dot(sy, x, preferred_element_type=f32)
        return jnp.where(row_mask, jnp.abs(x - nbr), 0.0)

    if use_laplacian:   # compute_laplacian(...)[:2] == (dxx, dyy)
        fx = lambda x: grad_x(grad_x(x))
        fy = lambda x: grad_y(grad_y(x))
    else:               # compute_grad(...) == (dx, dy)
        fx, fy = grad_x, grad_y

    def sum_all(x):     # (h, w) -> (1, 1): lane reduce then sublane reduce
        return jnp.sum(jnp.sum(x, axis=-1, keepdims=True), axis=-2,
                       keepdims=True)

    # ---- disparity branch: mean-normalize, gradients, gradient magnitude ----
    d = disp_ref[0, 0]                                     # (h, w)
    mean = sum_all(d) * (1.0 / (h * w))                    # (1, 1)
    d = d / jnp.maximum(mean, _F32_EPS)                    # ops.mean_normalize
    ddx = fx(d)
    ddy = fy(d)
    dgrad_ref[0, 0] = jnp.sqrt(jnp.maximum(ddx * ddx + ddy * ddy, _F32_EPS))

    # ---- image branch: per-channel gradients, channel mean, magnitude -------
    acc_x = jnp.zeros((h, w), f32)
    acc_y = jnp.zeros((h, w), f32)
    for c in range(num_ch):                                # static unroll
        xc = img_ref[0, c]
        acc_x = acc_x + fx(xc)
        acc_y = acc_y + fy(xc)
    idx = acc_x * (1.0 / num_ch)
    idy = acc_y * (1.0 / num_ch)
    igrad_ref[0, 0] = jnp.sqrt(jnp.maximum(idx * idx + idy * idy, _F32_EPS))

    # ---- edge-aware weighting + per-batch loss partial sum ------------------
    if use_edges:
        ddx = ddx * jnp.exp(-idx)
        ddy = ddy * jnp.exp(-idy)
    s = sum_all(ddx + ddy)                                  # (1, 1)
    loss_ref[0] = jnp.broadcast_to(s, (1, 128))             # lane-dense store


# ----------------------------------------------------------------------------
# Wrapper
# ----------------------------------------------------------------------------
def smooth_reg(disp, img, *, use_edges=False, use_laplacian=False,
               use_blur=False):
    """SmoothReg forward.  disp: (b, 1, h, w), img: (b, c, h, w), NCHW f32.

    Returns (loss, {'disp_grad': (b,1,h,w), 'image_grad': (b,1,h,w)}).
    """
    if use_blur:
        # TODO(synk): gaussian_blur2d(3x3, sigma=1) pre-filter not implemented.
        raise NotImplementedError("use_blur is not supported")

    b, dc, h, w = disp.shape
    assert dc == 1, "disp must be (b, 1, h, w)"
    num_ch = img.shape[1]

    kernel = functools.partial(_smooth_reg_kernel, use_edges=use_edges,
                               use_laplacian=use_laplacian, num_ch=num_ch)

    dgrad, igrad, loss_parts = pl.pallas_call(
        kernel,
        out_shape=(
            jax.ShapeDtypeStruct((b, 1, h, w), jnp.float32),   # disp_grad
            jax.ShapeDtypeStruct((b, 1, h, w), jnp.float32),   # image_grad
            jax.ShapeDtypeStruct((b, 1, 128), jnp.float32),    # per-batch sums
        ),
        grid_spec=pltpu.PrefetchScalarGridSpec(
            num_scalar_prefetch=0,
            grid=(b,),                                         # one image / step
            in_specs=[
                pl.BlockSpec((1, 1, h, w), lambda i: (i, 0, 0, 0)),
                pl.BlockSpec((1, num_ch, h, w), lambda i: (i, 0, 0, 0)),
            ],
            out_specs=(
                pl.BlockSpec((1, 1, h, w), lambda i: (i, 0, 0, 0)),
                pl.BlockSpec((1, 1, h, w), lambda i: (i, 0, 0, 0)),
                pl.BlockSpec((1, 1, 128), lambda i: (i, 0, 0)),
            ),
        ),
        compiler_params=pltpu.CompilerParams(
            dimension_semantics=("parallel",)),                # v7x megacore
    )(disp, img)

    loss = jnp.sum(loss_parts[:, 0, 0]) / (b * h * w)
    return loss, {"disp_grad": dgrad, "image_grad": igrad}


# ----------------------------------------------------------------------------
# Pure-JAX reference (mirrors the PyTorch code) for verification.
# ----------------------------------------------------------------------------
def _ref_abs_grad(x):
    b, c, h, w = x.shape
    dx = jnp.abs(x[..., :, :-1] - x[..., :, 1:])
    dx = jnp.concatenate([dx, jnp.zeros((b, c, h, 1), x.dtype)], axis=-1)
    dy = jnp.abs(x[..., :-1, :] - x[..., 1:, :])
    dy = jnp.concatenate([dy, jnp.zeros((b, c, 1, w), x.dtype)], axis=-2)
    return dx, dy


def smooth_reg_reference(disp, img, *, use_edges=False, use_laplacian=False):
    def fn(x):
        dx, dy = _ref_abs_grad(x)
        if use_laplacian:
            dxx, _ = _ref_abs_grad(dx)
            _, dyy = _ref_abs_grad(dy)
            return dxx, dyy
        return dx, dy

    mean = jnp.mean(disp, axis=(2, 3), keepdims=True)
    d = disp / jnp.maximum(mean, _F32_EPS)
    ddx, ddy = fn(d)
    disp_grad = jnp.sqrt(jnp.maximum(ddx ** 2 + ddy ** 2, _F32_EPS))
    idx, idy = fn(img)
    idx = jnp.mean(idx, axis=1, keepdims=True)
    idy = jnp.mean(idy, axis=1, keepdims=True)
    image_grad = jnp.sqrt(jnp.maximum(idx ** 2 + idy ** 2, _F32_EPS))
    if use_edges:
        ddx = ddx * jnp.exp(-idx)
        ddy = ddy * jnp.exp(-idy)
    loss = jnp.mean(ddx) + jnp.mean(ddy)
    return loss, disp_grad, image_grad


# ----------------------------------------------------------------------------
# Main
# ----------------------------------------------------------------------------
if __name__ == "__main__":
    key = jax.random.PRNGKey(0)
    kd, ki = jax.random.split(key)
    B, C, H, W = 2, 3, 32, 128
    disp = jax.nn.sigmoid(jax.random.normal(kd, (B, 1, H, W), jnp.float32))
    img = jax.random.uniform(ki, (B, C, H, W), jnp.float32)

    configs = ((False, False), (True, False), (False, True))  # (edges, laplacian)
    for use_edges, use_laplacian in configs:
        fwd = jax.jit(functools.partial(smooth_reg, use_edges=use_edges,
                                        use_laplacian=use_laplacian))
        loss, aux = fwd(disp, img)
        jax.block_until_ready((loss, aux))

        ref_loss, ref_dgrad, ref_igrad = smooth_reg_reference(
            disp, img, use_edges=use_edges, use_laplacian=use_laplacian)
        np.testing.assert_allclose(np.asarray(loss), np.asarray(ref_loss),
                                   rtol=1e-4, atol=1e-6)
        np.testing.assert_allclose(np.asarray(aux["disp_grad"]),
                                   np.asarray(ref_dgrad), rtol=1e-4, atol=1e-5)
        np.testing.assert_allclose(np.asarray(aux["image_grad"]),
                                   np.asarray(ref_igrad), rtol=1e-4, atol=1e-5)

    print("KERNEL_OK")
</pallas_src>

<mosaic_0001>
module attributes {stable_mosaic.version = 11 : i64} {
  func.func @_smooth_reg_kernel(%arg0: i32, %arg1: memref<1x1x32x128xf32, #tpu.memory_space<vmem>>, %arg2: memref<1x3x32x128xf32, #tpu.memory_space<vmem>>, %arg3: memref<1x1x32x128xf32, #tpu.memory_space<vmem>>, %arg4: memref<1x1x32x128xf32, #tpu.memory_space<vmem>>, %arg5: memref<1x1x128xf32, #tpu.memory_space<vmem>>) attributes {dimension_semantics = [#tpu.dimension_semantics<parallel>], iteration_bounds = array<i64: 2>, scalar_prefetch = 0 : i64, scratch_operands = 0 : i64, tpu.core_type = #tpu.core_type<tc>, window_params = [{transform_indices = @transform_0, window_bounds = array<i64: 1, 1, 32, 128>}, {transform_indices = @transform_1, window_bounds = array<i64: 1, 3, 32, 128>}, {transform_indices = @transform_2, window_bounds = array<i64: 1, 1, 32, 128>}, {transform_indices = @transform_3, window_bounds = array<i64: 1, 1, 32, 128>}, {transform_indices = @transform_4, window_bounds = array<i64: 1, 1, 128>}]} {
    %0 = tpu.iota {dimensions = array<i32: 1>} : vector<32x128xi32>
    %1 = tpu.iota {dimensions = array<i32: 0>} : vector<32x128xi32>
    %c127_i32 = arith.constant 127 : i32
    %2 = vector.broadcast %c127_i32 : i32 to vector<32x128xi32>
    %3 = arith.cmpi slt, %0, %2 : vector<32x128xi32>
    %c31_i32 = arith.constant 31 : i32
    %4 = vector.broadcast %c31_i32 : i32 to vector<32x128xi32>
    %5 = arith.cmpi slt, %1, %4 : vector<32x128xi32>
    %6 = tpu.iota {dimensions = array<i32: 0>} : vector<128x128xi32>
    %7 = tpu.iota {dimensions = array<i32: 1>} : vector<128x128xi32>
    %c1_i32 = arith.constant 1 : i32
    %8 = vector.broadcast %c1_i32 : i32 to vector<128x128xi32>
    %9 = arith.addi %7, %8 : vector<128x128xi32>
    %10 = arith.cmpi eq, %6, %9 : vector<128x128xi32>
    %cst = arith.constant 1.000000e+00 : f32
    %cst_0 = arith.constant 0.000000e+00 : f32
    %11 = vector.broadcast %cst : f32 to vector<128x128xf32>
    %12 = vector.broadcast %cst_0 : f32 to vector<128x128xf32>
    %13 = arith.select %10, %11, %12 : vector<128x128xi1>, vector<128x128xf32>
    %14 = tpu.iota {dimensions = array<i32: 1>} : vector<32x32xi32>
    %15 = tpu.iota {dimensions = array<i32: 0>} : vector<32x32xi32>
    %c1_i32_1 = arith.constant 1 : i32
    %16 = vector.broadcast %c1_i32_1 : i32 to vector<32x32xi32>
    %17 = arith.addi %15, %16 : vector<32x32xi32>
    %18 = arith.cmpi eq, %14, %17 : vector<32x32xi32>
    %cst_2 = arith.constant 1.000000e+00 : f32
    %cst_3 = arith.constant 0.000000e+00 : f32
    %19 = vector.broadcast %cst_2 : f32 to vector<32x32xf32>
    %20 = vector.broadcast %cst_3 : f32 to vector<32x32xf32>
    %21 = arith.select %18, %19, %20 : vector<32x32xi1>, vector<32x32xf32>
    %c0 = arith.constant 0 : index
    %c0_4 = arith.constant 0 : index
    %c0_5 = arith.constant 0 : index
    %c0_6 = arith.constant 0 : index
    %22 = vector.load %arg1[%c0, %c0_4, %c0_5, %c0_6] : memref<1x1x32x128xf32, #tpu.memory_space<vmem>>, vector<1x1x32x128xf32>
    %23 = vector.shape_cast %22 : vector<1x1x32x128xf32> to vector<32x128xf32>
    %cst_7 = arith.constant dense<0.000000e+00> : vector<32xf32>
    %24 = vector.multi_reduction <add>, %23, %cst_7 [1] : vector<32x128xf32> to vector<32xf32>
    %25 = vector.shape_cast %24 : vector<32xf32> to vector<32x1xf32>
    %cst_8 = arith.constant dense<0.000000e+00> : vector<1xf32>
    %26 = vector.multi_reduction <add>, %25, %cst_8 [0] : vector<32x1xf32> to vector<1xf32>
    %27 = vector.shape_cast %26 : vector<1xf32> to vector<1x1xf32>
    %cst_9 = arith.constant 2.44140625E-4 : f32
    %28 = vector.broadcast %cst_9 : f32 to vector<1x1xf32>
    %29 = arith.mulf %27, %28 : vector<1x1xf32>
    %cst_10 = arith.constant 1.1920929E-7 : f32
    %30 = vector.broadcast %cst_10 : f32 to vector<1x1xf32>
    %31 = arith.maximumf %29, %30 : vector<1x1xf32>
    %32 = vector.broadcast %31 : vector<1x1xf32> to vector<32x128xf32>
    %33 = arith.divf %23, %32 : vector<32x128xf32>
    %cst_11 = arith.constant dense<0.000000e+00> : vector<32x128xf32>
    %34 = tpu.matmul %33, %13, %cst_11 {dimension_numbers = #tpu.dot_dimension_numbers<[1], [0], [0], [1], [0, 0, 1, 1], [], []>} : vector<32x128xf32>, vector<128x128xf32>, vector<32x128xf32> -> vector<32x128xf32>
    %35 = arith.subf %33, %34 : vector<32x128xf32>
    %36 = math.absf %35 : vector<32x128xf32>
    %cst_12 = arith.constant 0.000000e+00 : f32
    %37 = vector.broadcast %cst_12 : f32 to vector<32x128xf32>
    %38 = arith.select %3, %36, %37 : vector<32x128xi1>, vector<32x128xf32>
    %cst_13 = arith.constant dense<0.000000e+00> : vector<32x128xf32>
    %39 = tpu.matmul %21, %33, %cst_13 {dimension_numbers = #tpu.dot_dimension_numbers<[1], [0], [0], [1], [0, 0, 1, 1], [], []>} : vector<32x32xf32>, vector<32x128xf32>, vector<32x128xf32> -> vector<32x128xf32>
    %40 = arith.subf %33, %39 : vector<32x128xf32>
    %41 = math.absf %40 : vector<32x128xf32>
    %cst_14 = arith.constant 0.000000e+00 : f32
    %42 = vector.broadcast %cst_14 : f32 to vector<32x128xf32>
    %43 = arith.select %5, %41, %42 : vector<32x128xi1>, vector<32x128xf32>
    %44 = arith.mulf %38, %38 : vector<32x128xf32>
    %45 = arith.mulf %43, %43 : vector<32x128xf32>
    %46 = arith.addf %44, %45 : vector<32x128xf32>
    %cst_15 = arith.constant 1.1920929E-7 : f32
    %47 = vector.broadcast %cst_15 : f32 to vector<32x128xf32>
    %48 = arith.maximumf %46, %47 : vector<32x128xf32>
    %49 = math.sqrt %48 : vector<32x128xf32>
    %c0_16 = arith.constant 0 : index
    %c0_17 = arith.constant 0 : index
    %c0_18 = arith.constant 0 : index
    %c0_19 = arith.constant 0 : index
    %50 = vector.load %arg3[%c0_16, %c0_17, %c0_18, %c0_19] : memref<1x1x32x128xf32, #tpu.memory_space<vmem>>, vector<1x1x32x128xf32>
    %51 = vector.shape_cast %50 : vector<1x1x32x128xf32> to vector<32x128xf32>
    %52 = vector.shape_cast %49 : vector<32x128xf32> to vector<1x1x32x128xf32>
    tpu.vector_store %arg3[%c0_16, %c0_17, %c0_18, %c0_19], %52 {strides = array<i32>} : memref<1x1x32x128xf32, #tpu.memory_space<vmem>>, vector<1x1x32x128xf32>,
    %cst_20 = arith.constant 0.000000e+00 : f32
    %53 = vector.broadcast %cst_20 : f32 to vector<32x128xf32>
    %cst_21 = arith.constant 0.000000e+00 : f32
    %54 = vector.broadcast %cst_21 : f32 to vector<32x128xf32>
    %c0_22 = arith.constant 0 : index
    %c0_23 = arith.constant 0 : index
    %c0_24 = arith.constant 0 : index
    %c0_25 = arith.constant 0 : index
    %55 = vector.load %arg2[%c0_22, %c0_23, %c0_24, %c0_25] : memref<1x3x32x128xf32, #tpu.memory_space<vmem>>, vector<1x1x32x128xf32>
    %56 = vector.shape_cast %55 : vector<1x1x32x128xf32> to vector<32x128xf32>
    %cst_26 = arith.constant dense<0.000000e+00> : vector<32x128xf32>
    %57 = tpu.matmul %56, %13, %cst_26 {dimension_numbers = #tpu.dot_dimension_numbers<[1], [0], [0], [1], [0, 0, 1, 1], [], []>} : vector<32x128xf32>, vector<128x128xf32>, vector<32x128xf32> -> vector<32x128xf32>
    %58 = arith.subf %56, %57 : vector<32x128xf32>
    %59 = math.absf %58 : vector<32x128xf32>
    %cst_27 = arith.constant 0.000000e+00 : f32
    %60 = vector.broadcast %cst_27 : f32 to vector<32x128xf32>
    %61 = arith.select %3, %59, %60 : vector<32x128xi1>, vector<32x128xf32>
    %62 = arith.addf %53, %61 : vector<32x128xf32>
    %cst_28 = arith.constant dense<0.000000e+00> : vector<32x128xf32>
    %63 = tpu.matmul %21, %56, %cst_28 {dimension_numbers = #tpu.dot_dimension_numbers<[1], [0], [0], [1], [0, 0, 1, 1], [], []>} : vector<32x32xf32>, vector<32x128xf32>, vector<32x128xf32> -> vector<32x128xf32>
    %64 = arith.subf %56, %63 : vector<32x128xf32>
    %65 = math.absf %64 : vector<32x128xf32>
    %cst_29 = arith.constant 0.000000e+00 : f32
    %66 = vector.broadcast %cst_29 : f32 to vector<32x128xf32>
    %67 = arith.select %5, %65, %66 : vector<32x128xi1>, vector<32x128xf32>
    %68 = arith.addf %54, %67 : vector<32x128xf32>
    %c0_30 = arith.constant 0 : index
    %c1 = arith.constant 1 : index
    %c0_31 = arith.constant 0 : index
    %c0_32 = arith.constant 0 : index
    %69 = vector.load %arg2[%c0_30, %c1, %c0_31, %c0_32] : memref<1x3x32x128xf32, #tpu.memory_space<vmem>>, vector<1x1x32x128xf32>
    %70 = vector.shape_cast %69 : vector<1x1x32x128xf32> to vector<32x128xf32>
    %cst_33 = arith.constant dense<0.000000e+00> : vector<32x128xf32>
    %71 = tpu.matmul %70, %13, %cst_33 {dimension_numbers = #tpu.dot_dimension_numbers<[1], [0], [0], [1], [0, 0, 1, 1], [], []>} : vector<32x128xf32>, vector<128x128xf32>, vector<32x128xf32> -> vector<32x128xf32>
    %72 = arith.subf %70, %71 : vector<32x128xf32>
    %73 = math.absf %72 : vector<32x128xf32>
    %cst_34 = arith.constant 0.000000e+00 : f32
    %74 = vector.broadcast %cst_34 : f32 to vector<32x128xf32>
    %75 = arith.select %3, %73, %74 : vector<32x128xi1>, vector<32x128xf32>
    %76 = arith.addf %62, %75 : vector<32x128xf32>
    %cst_35 = arith.constant dense<0.000000e+00> : vector<32x128xf32>
    %77 = tpu.matmul %21, %70, %cst_35 {dimension_numbers = #tpu.dot_dimension_numbers<[1], [0], [0], [1], [0, 0, 1, 1], [], []>} : vector<32x32xf32>, vector<32x128xf32>, vector<32x128xf32> -> vector<32x128xf32>
    %78 = arith.subf %70, %77 : vector<32x128xf32>
    %79 = math.absf %78 : vector<32x128xf32>
    %cst_36 = arith.constant 0.000000e+00 : f32
    %80 = vector.broadcast %cst_36 : f32 to vector<32x128xf32>
    %81 = arith.select %5, %79, %80 : vector<32x128xi1>, vector<32x128xf32>
    %82 = arith.addf %68, %81 : vector<32x128xf32>
    %c0_37 = arith.constant 0 : index
    %c2 = arith.constant 2 : index
    %c0_38 = arith.constant 0 : index
    %c0_39 = arith.constant 0 : index
    %83 = vector.load %arg2[%c0_37, %c2, %c0_38, %c0_39] : memref<1x3x32x128xf32, #tpu.memory_space<vmem>>, vector<1x1x32x128xf32>
    %84 = vector.shape_cast %83 : vector<1x1x32x128xf32> to vector<32x128xf32>
    %cst_40 = arith.constant dense<0.000000e+00> : vector<32x128xf32>
    %85 = tpu.matmul %84, %13, %cst_40 {dimension_numbers = #tpu.dot_dimension_numbers<[1], [0], [0], [1], [0, 0, 1, 1], [], []>} : vector<32x128xf32>, vector<128x128xf32>, vector<32x128xf32> -> vector<32x128xf32>
    %86 = arith.subf %84, %85 : vector<32x128xf32>
    %87 = math.absf %86 : vector<32x128xf32>
    %cst_41 = arith.constant 0.000000e+00 : f32
    %88 = vector.broadcast %cst_41 : f32 to vector<32x128xf32>
    %89 = arith.select %3, %87, %88 : vector<32x128xi1>, vector<32x128xf32>
    %90 = arith.addf %76, %89 : vector<32x128xf32>
    %cst_42 = arith.constant dense<0.000000e+00> : vector<32x128xf32>
    %91 = tpu.matmul %21, %84, %cst_42 {dimension_numbers = #tpu.dot_dimension_numbers<[1], [0], [0], [1], [0, 0, 1, 1], [], []>} : vector<32x32xf32>, vector<32x128xf32>, vector<32x128xf32> -> vector<32x128xf32>
    %92 = arith.subf %84, %91 : vector<32x128xf32>
    %93 = math.absf %92 : vector<32x128xf32>
    %cst_43 = arith.constant 0.000000e+00 : f32
    %94 = vector.broadcast %cst_43 : f32 to vector<32x128xf32>
    %95 = arith.select %5, %93, %94 : vector<32x128xi1>, vector<32x128xf32>
    %96 = arith.addf %82, %95 : vector<32x128xf32>
    %cst_44 = arith.constant 0.333333343 : f32
    %97 = vector.broadcast %cst_44 : f32 to vector<32x128xf32>
    %98 = arith.mulf %90, %97 : vector<32x128xf32>
    %cst_45 = arith.constant 0.333333343 : f32
    %99 = vector.broadcast %cst_45 : f32 to vector<32x128xf32>
    %100 = arith.mulf %96, %99 : vector<32x128xf32>
    %101 = arith.mulf %98, %98 : vector<32x128xf32>
    %102 = arith.mulf %100, %100 : vector<32x128xf32>
    %103 = arith.addf %101, %102 : vector<32x128xf32>
    %cst_46 = arith.constant 1.1920929E-7 : f32
    %104 = vector.broadcast %cst_46 : f32 to vector<32x128xf32>
    %105 = arith.maximumf %103, %104 : vector<32x128xf32>
    %106 = math.sqrt %105 : vector<32x128xf32>
    %c0_47 = arith.constant 0 : index
    %c0_48 = arith.constant 0 : index
    %c0_49 = arith.constant 0 : index
    %c0_50 = arith.constant 0 : index
    %107 = vector.load %arg4[%c0_47, %c0_48, %c0_49, %c0_50] : memref<1x1x32x128xf32, #tpu.memory_space<vmem>>, vector<1x1x32x128xf32>
    %108 = vector.shape_cast %107 : vector<1x1x32x128xf32> to vector<32x128xf32>
    %109 = vector.shape_cast %106 : vector<32x128xf32> to vector<1x1x32x128xf32>
    tpu.vector_store %arg4[%c0_47, %c0_48, %c0_49, %c0_50], %109 {strides = array<i32>} : memref<1x1x32x128xf32, #tpu.memory_space<vmem>>, vector<1x1x32x128xf32>,
    %110 = arith.addf %38, %43 : vector<32x128xf32>
    %cst_51 = arith.constant dense<0.000000e+00> : vector<32xf32>
    %111 = vector.multi_reduction <add>, %110, %cst_51 [1] : vector<32x128xf32> to vector<32xf32>
    %112 = vector.shape_cast %111 : vector<32xf32> to vector<32x1xf32>
    %cst_52 = arith.constant dense<0.000000e+00> : vector<1xf32>
    %113 = vector.multi_reduction <add>, %112, %cst_52 [0] : vector<32x1xf32> to vector<1xf32>
    %114 = vector.shape_cast %113 : vector<1xf32> to vector<1x1xf32>
    %115 = vector.shape_cast %114 : vector<1x1xf32> to vector<1x1xf32>
    %116 = vector.broadcast %115 : vector<1x1xf32> to vector<1x128xf32>
    %c0_53 = arith.constant 0 : index
    %c0_54 = arith.constant 0 : index
    %c0_55 = arith.constant 0 : index
    %117 = vector.load %arg5[%c0_53, %c0_54, %c0_55] : memref<1x1x128xf32, #tpu.memory_space<vmem>>, vector<1x1x128xf32>
    %118 = vector.shape_cast %117 : vector<1x1x128xf32> to vector<1x128xf32>
    %119 = vector.shape_cast %116 : vector<1x128xf32> to vector<1x1x128xf32>
    tpu.vector_store %arg5[%c0_53, %c0_54, %c0_55], %119 {strides = array<i32>} : memref<1x1x128xf32, #tpu.memory_space<vmem>>, vector<1x1x128xf32>,
    return
  }
  func.func @transform_0(%arg0: i32) -> (i32, i32, i32, i32) {
    %c0_i32 = arith.constant 0 : i32
    %c0_i32_0 = arith.constant 0 : i32
    %c0_i32_1 = arith.constant 0 : i32
    %c0_i32_2 = arith.constant 0 : i32
    return %arg0, %c0_i32, %c0_i32_0, %c0_i32_1 : i32, i32, i32, i32
  }
  func.func @transform_1(%arg0: i32) -> (i32, i32, i32, i32) {
    %c0_i32 = arith.constant 0 : i32
    %c0_i32_0 = arith.constant 0 : i32
    %c0_i32_1 = arith.constant 0 : i32
    %c0_i32_2 = arith.constant 0 : i32
    return %arg0, %c0_i32, %c0_i32_0, %c0_i32_1 : i32, i32, i32, i32
  }
  func.func @transform_2(%arg0: i32) -> (i32, i32, i32, i32) {
    %c0_i32 = arith.constant 0 : i32
    %c0_i32_0 = arith.constant 0 : i32
    %c0_i32_1 = arith.constant 0 : i32
    %c0_i32_2 = arith.constant 0 : i32
    return %arg0, %c0_i32, %c0_i32_0, %c0_i32_1 : i32, i32, i32, i32
  }
  func.func @transform_3(%arg0: i32) -> (i32, i32, i32, i32) {
    %c0_i32 = arith.constant 0 : i32
    %c0_i32_0 = arith.constant 0 : i32
    %c0_i32_1 = arith.constant 0 : i32
    %c0_i32_2 = arith.constant 0 : i32
    return %arg0, %c0_i32, %c0_i32_0, %c0_i32_1 : i32, i32, i32, i32
  }
  func.func @transform_4(%arg0: i32) -> (i32, i32, i32) {
    %c0_i32 = arith.constant 0 : i32
    %c0_i32_0 = arith.constant 0 : i32
    %c0_i32_1 = arith.constant 0 : i32
    return %arg0, %c0_i32, %c0_i32_0 : i32, i32, i32
  }
}

</mosaic_0001>

<bundles_post_ra>
// kernel: smooth_reg.1
= control target key start
LH: loop header
LB: loop body
LE: loop exit
PB: predicated region body
PF: predicated region fallthrough
CT: control target
= control target key end

     0   :  { %10 = vsyncpa [#allocation3], 0  ;;  %s3128_s0 = inlined_call_operand.hbm [shape: f32[2,1,32,128], index: 0, kind: input, shape index: {}]   ;;  %s3129_s1 = inlined_call_operand.hbm [shape: f32[2,3,32,128], index: 1, kind: input, shape index: {}]   ;;  %s3130_s2 = inlined_call_operand.hbm [shape: f32[2,1,32,128], index: 2, kind: output, shape index: {0}]   ;;  %s3131_s3 = inlined_call_operand.hbm [shape: f32[2,1,32,128], index: 3, kind: output, shape index: {1}]   ;;  %s3132_s4 = inlined_call_operand.vmem [shape: f32[2,1,128], index: 4, kind: output, shape index: {2}]  }
   0x1   :  { %12 = vsyncpa [#allocation3 + $0x1], 0 }
   0x2   :  { %13 = vsyncpa [#allocation6], 0 }
   0x3   :  { %15 = vsyncpa [#allocation6 + $0x1], 0 }
   0x4   :  { %16 = vsyncpa [#allocation4], 0 }
   0x5   :  { %18 = vsyncpa [#allocation4 + $0x1], 0 }
   0x6   :  { %19 = vsyncpa [#allocation9], 0 }
   0x7   :  { %21 = vsyncpa [#allocation9 + $0x1], 0  ;;  %s2385_s15 = smov 0   ;;  %s2387_s16 = smov 0  }
   0x8   :  { %s2389_s17 = smov 0   ;;  %s2391_s18 = smov 0  }
   0x9 LB: > { %s2406_s19 = sadd.s32 4294967295, %s2348_s18   ;;  %s1513_s20 = sadd.s32 4294967294, %s2348_s18   ;;  %s2348_s18 = sphi %s2391_s18, %s3164_s18   ;;  %s2344_s17 = sphi %s2389_s17, %s3163_s17   ;;  %s2340_s16 = sphi %s2387_s16, %s3162_s16   ;;  %s2336_s15 = sphi %s2385_s15, %s3161_s15  }
   0xa   : > { %s2410_s21 = sadd.s32 1, %s2348_s18   ;;  %s34_s22 = sadd.s32 1, %s2344_s17 }
   0xb   : > { %s31_s23 = ssub.s32 %s2348_s18, %s2410_s21  ;;  %p41_p0 = scmp.ne.s32.totalorder %s2344_s17, %s2340_s16 }
   0xc   : > { %p32_p1 = scmp.eq.s32.totalorder %s31_s23, 0  ;;  %p42_p2 = scmp.eq.s32.totalorder %s2348_s18, 0 }
   0xd   : > { %p47_p3 = scmp.ne.s32.totalorder %s2340_s16, %s2336_s15  ;;  %p48_p4 = scmp.eq.s32.totalorder %s2406_s19, 0 }
   0xe   : > { %s2422_s24 = scalar_select %p32_p1, %s2344_s17, %s34_s22  }
   0xf   : > { %p2424_p5 = por %p42_p2, %p41_p0  ;;  %p2428_p6 = por %p48_p4, %p47_p3 }
  0x10   : > { %p97_p7 = scmp.eq.s32.totalorder %s2406_s19, 1  ;;  %p103_p8 = scmp.eq.s32.totalorder %s1513_s20, 1 }
  0x11   : > { %s3136_s26 = scalar_select %p2428_p6, 1, 0 }
  0x12   : > { %p2128_p10 = scmp.lt.s32.totalorder %s2348_s18, 2  ;;  %p2435_p11 = por %p97_p7, %p41_p0 }
  0x13   : > { %p2439_p12 = por %p103_p8, %p47_p3  ;;  %s2444_s29 = sand.u32 1, %s2344_s17  }
  0x14   : > { %s3137_s27 = scalar_select %p2435_p11, 1, 0 }
  0x15   : > { %s3138_s28 = scalar_select %p2439_p12, 1, 0 }
  0x16   : > { %s1620_s30 = sshll.u32 %s2348_s18, 9  ;;  %s1516_s5 = sshll.u32 %s2444_s29, 5 }
  0x17   : > { %s2451_s8 = scalar_lea.hbm %s3128_s0, %s1620_s30  ;;  %s179_s9 = scalar_lea.vmem [#allocation2], %s1516_s5 }
  0x18   : > { %s186_s10 = sshll.u32 %s179_s9, 4  ;;  %p2455_p13 = pnand %p2128_p10, %p2424_p5  ;;  %s2459_s10 = int_to_ptr.vmem [resolvable:$true] %s186_s10 }
  0x19   : > { %s176_s12 = scalar_lea.sflag [#allocation3], %s2444_s29  ;;  %s2186_s13 = scalar_lea.hbm %s2451_s8, 512 }
  0x1a   : > { %p2187_p0 = scmp.ne.s32.totalorder %s2451_s8, %s2186_s13  ;;  %p2188_p1 = pneg %p2455_p13 }
  0x1b   : > { %s2191_s22 = scalar_lea.hbm %s3128_s0, 1024  ;;  %p2192_p4 = scmp.lt.u32.totalorder %s2451_s8, %s3128_s0 }
  0x1c   : > { %p2189_p2 = pnand %p2188_p1, %p2187_p0  ;;  %p2193_p5 = scmp.lt.u32.totalorder %s2191_s22, %s2186_s13 }
  0x1d   : > { %p2195_p8 = scmp.lt.u32.totalorder %s2186_s13, %s2451_s8 }
  0x1e   : > { %p2190_p3 = pneg %p2189_p2  ;;  %p2194_p7 = por %p2193_p5, %p2192_p4 }
  0x20   : > { %p2196_p10 = por %p2195_p8, %p2194_p7 }
  0x22   : > { %p2197_p9 = pnand %p2196_p10, %p2190_p3 }
  0x24   : > { %2200 = shalt.err (!%p2197_p9)
}
  0x25   : > { %s2201_s30 = scalar_lea.vmem %s2459_s10, 512  ;;  %s2350_s5 = smov [#allocation2]  }
  0x26   : > { %p2202_p0 = scmp.ne.s32.totalorder %s2459_s10, %s2201_s30  ;;  %s2206_s6 = sshll.u32 %s2350_s5, 4  ;;  %s2207_s6 = int_to_ptr.vmem [resolvable:$false] %s2206_s6 }
  0x27   : > { %s2208_s7 = scalar_lea.vmem %s2207_s6, 1024  ;;  %p2209_p11 = scmp.lt.s32.totalorder %s2459_s10, %s2207_s6 }
  0x28   : > { %p2204_p2 = pnand %p2202_p0, %p2188_p1  ;;  %p2210_p4 = scmp.lt.s32.totalorder %s2208_s7, %s2201_s30 }
  0x2a   : > { %p2205_p12 = pneg %p2204_p2  ;;  %p2211_p5 = por %p2210_p4, %p2209_p11 }
  0x2c   : > { %p2212_p7 = pnand %p2211_p5, %p2205_p12 }
  0x2e   : > { %2215 = shalt.err (!%p2212_p7)
}
  0x2f   : > { %s2351_s9 = smov 128   ;;  %s2352_s13 = smov 8  }
  0x30   : > { %2117 = dma.hbm_to_vmem [thread:$0]  (!%p2455_p13), %s2451_s8, 512, %s2459_s10, %s176_s12, %s2351_s9, %s2351_s9, %s2352_s13  }
  0x31   : > { %p1520_p9 = scmp.ge.s32.totalorder %s2348_s18, 1  ;;  %p215_p11 = scmp.lt.s32.totalorder %s2348_s18, 3 }
  0x32   : > { %s2103_s14 = smul.u32 96, %s2444_s29  ;;  %s197_s8 = scalar_lea.sflag [#allocation6], %s2444_s29 }
  0x33   : > { %p2495_p12 = pnand %p1520_p9, %p215_p11  ;;  %s2104_s22 = smul.u32 1536, %s2348_s18 }
  0x34   : > { %s200_s5 = scalar_lea.vmem [#allocation5], %s2103_s14 }
  0x35   : > { %s2503_s30 = scalar_lea.hbm %s3129_s1, %s2104_s22  ;;  %s207_s6 = sshll.u32 %s200_s5, 4  ;;  %s2505_s6 = int_to_ptr.vmem [resolvable:$true] %s207_s6 }
  0x36   : > { %s2216_s10 = scalar_lea.hbm %s2503_s30, 1536  ;;  %s2221_s22 = scalar_lea.hbm %s3129_s1, 3072 }
  0x37   : > { %p2217_p3 = scmp.ne.s32.totalorder %s2503_s30, %s2216_s10  ;;  %p2222_p0 = scmp.lt.u32.totalorder %s2503_s30, %s3129_s1 }
  0x38   : > { %p2223_p2 = scmp.lt.u32.totalorder %s2221_s22, %s2216_s10  ;;  %p2225_p5 = scmp.lt.u32.totalorder %s2216_s10, %s2503_s30 }
  0x39   : > { %p2219_p8 = pnand %p2217_p3, %p2188_p1 }
  0x3a   : > { %p2224_p4 = por %p2223_p2, %p2222_p0 }
  0x3b   : > { %p2220_p10 = pneg %p2219_p8 }
  0x3c   : > { %p2226_p7 = por %p2225_p5, %p2224_p4 }
  0x3e   : > { %p2227_p9 = pnand %p2226_p7, %p2220_p10 }
  0x40   : > { %2230 = shalt.err (!%p2227_p9)
}
  0x41   : > { %s2231_s14 = scalar_lea.vmem %s2505_s6, 1536  ;;  %s2353_s5 = smov [#allocation5]  }
  0x42   : > { %p2232_p11 = scmp.ne.s32.totalorder %s2505_s6, %s2231_s14  ;;  %s2236_s12 = sshll.u32 %s2353_s5, 4  ;;  %s2237_s12 = int_to_ptr.vmem [resolvable:$false] %s2236_s12 }
  0x43   : > { %s2238_s7 = scalar_lea.vmem %s2237_s12, 3072  ;;  %p2239_p6 = scmp.lt.s32.totalorder %s2505_s6, %s2237_s12 }
  0x44   : > { %p2234_p3 = pnand %p2232_p11, %p2188_p1  ;;  %p2240_p0 = scmp.lt.s32.totalorder %s2238_s7, %s2231_s14 }
  0x46   : > { %p2235_p8 = pneg %p2234_p3  ;;  %p2241_p2 = por %p2240_p0, %p2239_p6 }
  0x48   : > { %p2242_p4 = pnand %p2241_p2, %p2235_p8 }
  0x4a   : > { %2245 = shalt.err (!%p2242_p4)
}
  0x4b   : > { %2120 = dma.hbm_to_vmem [thread:$0]  (!%p2455_p13), %s2503_s30, 1536, %s2505_s6, %s197_s8, %s2351_s9, %s2351_s9, %s2352_s13  }
  0x4c   : > { %219 = sbr.rel (%p2495_p12) target bundleno = 663 (0x297), region = 28  ;;  %s2539_s10 = sand.u32 (!%p2495_p12), 1, %s2340_s16  }
  0x4d   : > { %s2542_s22 = sshll.u32 (!%p2495_p12), %s2539_s10, 5  ;;  %s222_s11 = scalar_lea.sflag (!%p2495_p12), [#allocation3], %s2539_s10 }
  0x4e   : > { %s225_s23 = scalar_lea.vmem (!%p2495_p12), [#allocation2], %s2542_s22  ;;  %p3141_p6 = scmp.ne.s32.totalorder (!%p2495_p12), %s3136_s26, 0 }
  0x53   : > { %2319 = dma.done.wait (%p3141_p6), %s222_s11, 512  }
  0x54   : > { %2321 = vsyncadd (%p3141_p6), %s222_s11, 4294966784  ;;  %s2105_s29 = smul.u32 96, %s2539_s10  ;;  %s231_s9 = scalar_lea.sflag [#allocation6], %s2539_s10 }
  0x56   : > { %s2552_s13 = scalar_lea.vmem [#allocation5], %s2105_s29 }
  0x57   : > { %2323 = dma.done.wait (%p3141_p6), %s231_s9, 1536  }
  0x58   : > { %2325 = vsyncadd (%p3141_p6), %s231_s9, 4294965760  ;;  %v2558_v0 = vld [vmem:[%s225_s23] sm:$0xff]  ;;  %v2560_v1 = vld [vmem:[%s225_s23 + $0x10] sm:$0xff]  ;;  %v275_v4 = vlaneseq  ;;  %v2354_v10 = vmov 1.0|1.0   ;;  %v2355_v34 = vmov 0.0  }
  0x59   : > { %348 = vadd.xlane.f32.xlu0 %v2558_v0  ;;  %352 = vadd.xlane.f32.xlu1 %v2560_v1  ;;  %v2564_v2 = vld [vmem:[%s225_s23 + $0x8] sm:$0xff]  ;;  %v2566_v3 = vld [vmem:[%s225_s23 + $0x18] sm:$0xff]  ;;  %v2668_v39 = vld [vmem:[%s2552_s13] sm:$0xff]  ;;  %s2957_s26 = scalar_lea.vmem [#allocation7], %s2542_s22  ;;  %s1621_s20 = sshll.u32 %s2406_s19, 9 }
  0x5a   : > { %v2570_v5 = vand.u32 127, %v275_v4  ;;  %v278_v6 = vshrl.u32 %v275_v4, 7  ;;  %v2671_v40 = vld [vmem:[%s2552_s13 + $0x8] sm:$0xff]  ;;  %v2676_v58 = vld [vmem:[%s2552_s13 + $0x10] sm:$0xff]  ;;  %v2679_v59 = vld [vmem:[%s2552_s13 + $0x18] sm:$0xff]  ;;  %s1347_s30 = sshll.u32 %s2957_s26, 4  ;;  %s3010_s25 = scalar_lea.hbm %s3130_s2, %s1621_s20  ;;  %s3015_s30 = int_to_ptr.vmem [resolvable:$true] %s1347_s30 }
  0x5b   : > { %v2015_v41 = vpack.c.bf16 %v2671_v40, %v2668_v39  ;;  %s1326_s14 = scalar_lea.sflag [#allocation4], %s2539_s10  ;;  %s2246_s5 = scalar_lea.vmem %s3015_s30, 512 }
  0x5c   : > { %v279_v7 = vadd.s32 8, %v278_v6  ;;  %v299_v8 = vadd.s32 1, %v2570_v5  ;;  %v280_v11 = vadd.s32 16, %v278_v6  ;;  %v2580_v12 = vadd.s32 24, %v278_v6  ;;  %p2247_p13 = scmp.ne.s32.totalorder %s3015_s30, %s2246_s5  ;;  %p3158_p1 = scmp.ne.s32.totalorder %s3137_s27, 0 }
  0x5d   : > { %350 = vadd.xlane.f32.xlu0 %v2564_v2  ;;  %354 = vadd.xlane.f32.xlu1 %v2566_v3  ;;  %v287_v14 = vadd.s32 32, %v278_v6  ;;  %v288_v15 = vadd.s32 40, %v278_v6  ;;  %v289_v17 = vadd.s32 48, %v278_v6  ;;  %v290_v18 = vadd.s32 56, %v278_v6  ;;  %s2356_s12 = smov [#allocation7]  }
  0x5e   : > { %vm300_vm0 = vcmp.eq.s32.totalorder %v278_v6, %v299_v8  ;;  %vm301_vm1 = vcmp.eq.s32.totalorder %v279_v7, %v299_v8  ;;  %vm302_vm3 = vcmp.eq.s32.totalorder %v280_v11, %v299_v8  ;;  %vm303_vm4 = vcmp.eq.s32.totalorder %v2580_v12, %v299_v8  ;;  %p2248_p12 = pnand %p2247_p13, %p3158_p1  ;;  %s2250_s7 = sshll.u32 %s2356_s12, 4  ;;  %s2251_s7 = int_to_ptr.vmem [resolvable:$false] %s2250_s7 }
  0x5f   : > { %vm2573_vm2 = vmpackc.low %vm301_vm1, %vm300_vm0  ;;  %vm304_vm6 = vcmp.eq.s32.totalorder %v287_v14, %v299_v8  ;;  %vm305_vm7 = vcmp.eq.s32.totalorder %v288_v15, %v299_v8  ;;  %vm306_vm9 = vcmp.eq.s32.totalorder %v289_v17, %v299_v8  ;;  %vm307_vm10 = vcmp.eq.s32.totalorder %v290_v18, %v299_v8  ;;  %v2825_v15 = vld [vmem:[%s2552_s13 + $0x30] sm:$0xff]  ;;  %v2828_v17 = vld [vmem:[%s2552_s13 + $0x38] sm:$0xff]  ;;  %s2252_s11 = scalar_lea.vmem %s2251_s7, 1024  ;;  %p2253_p5 = scmp.lt.s32.totalorder %s3015_s30, %s2251_s7 }
  0x60   : > { %1944 = vmatprep.subr.msk.bf16.mxu0 %vm2573_vm2, %v2354_v10  ;;  %vm2586_vm5 = vmpackc.low %vm303_vm4, %vm302_vm3  ;;  %v291_v20 = vadd.s32 64, %v278_v6  ;;  %v292_v21 = vadd.s32 72, %v278_v6  ;;  %v293_v23 = vadd.s32 80, %v278_v6  ;;  %v294_v24 = vadd.s32 88, %v278_v6  ;;  %p2249_p10 = pneg %p2248_p12  ;;  %p2254_p7 = scmp.lt.s32.totalorder %s2252_s11, %s2246_s5 }
  0x61   : > { %1946 = vmatpush3.bf16.msk.msra.mxu0 %vm2573_vm2, %v2354_v10  ;;  %vm2596_vm8 = vmpackc.low %vm305_vm7, %vm304_vm6  ;;  %v295_v25 = vadd.s32 96, %v278_v6  ;;  %v296_v26 = vadd.s32 104, %v278_v6  ;;  %v297_v28 = vadd.s32 112, %v278_v6  ;;  %v298_v29 = vadd.s32 120, %v278_v6 }
  0x62   : > { %1948 = vmatprep.subr.msk.bf16.mxu0 %vm2586_vm5, %v2354_v10  ;;  %vm2606_vm11 = vmpackc.low %vm307_vm10, %vm306_vm9  ;;  %vm308_vm12 = vcmp.eq.s32.totalorder %v291_v20, %v299_v8  ;;  %vm309_vm13 = vcmp.eq.s32.totalorder %v292_v21, %v299_v8  ;;  %vm310_vm15 = vcmp.eq.s32.totalorder %v293_v23, %v299_v8  ;;  %vm311_vm0 = vcmp.eq.s32.totalorder %v294_v24, %v299_v8  ;;  %v2839_v20 = vld [vmem:[%s2552_s13 + $0x50] sm:$0xff]  ;;  %v2842_v21 = vld [vmem:[%s2552_s13 + $0x58] sm:$0xff]  ;;  %p2255_p9 = por %p2254_p7, %p2253_p5 }
  0x63   : > { %vm2616_vm14 = vmpackc.low %vm309_vm13, %vm308_vm12  ;;  %vm312_vm3 = vcmp.eq.s32.totalorder %v295_v25, %v299_v8  ;;  %vm313_vm4 = vcmp.eq.s32.totalorder %v296_v26, %v299_v8  ;;  %vm314_vm7 = vcmp.eq.s32.totalorder %v297_v28, %v299_v8  ;;  %vm315_vm9 = vcmp.eq.s32.totalorder %v298_v29, %v299_v8  ;;  %v2808_v8 = vld [vmem:[%s2552_s13 + $0x40] sm:$0xff] }
  0x64   : > { %vm2626_vm1 = vmpackc.low %vm311_vm0, %vm310_vm15  ;;  %v332_v32 = vadd.s32 1, %v278_v6  ;;  %v333_v33 = vadd.s32 1, %v279_v7  ;;  %vm469_vm13 = vcmask 261120   ;;  %v334_v37 = vadd.s32 1, %v280_v11  ;;  %v2802_v7 = vld [vmem:[%s2552_s13 + $0x28] sm:$0xff]  ;;  %p2256_p11 = pnand %p2255_p9, %p2249_p10 }
  0x65   : > { %1950 = vmatpush3.bf16.msk.msra.mxu0 %vm2586_vm5, %v2354_v10  ;;  %vm2636_vm6 = vmpackc.low %vm313_vm4, %vm312_vm3  ;;  %v2019_v6 = vpack.c.bf16 %v2679_v59, %v2676_v58  ;;  %v2811_v11 = vld [vmem:[%s2552_s13 + $0x48] sm:$0xff]  ;;  %v2059_v23 = vpack.c.bf16 %v2828_v17, %v2825_v15  ;;  %v2099_v24 = vpack.c.bf16 %v2842_v21, %v2839_v20 }
  0x66   : > { %1952 = vmatprep.subr.msk.bf16.mxu0 %vm2596_vm8, %v2354_v10  ;;  %vm2643_vm10 = vmpackc.low %vm315_vm9, %vm314_vm7  ;;  %vm336_vm12 = vcmp.eq.s32.totalorder %v2570_v5, %v332_v32  ;;  %vm337_vm15 = vcmp.eq.s32.totalorder %v2570_v5, %v333_v33  ;;  %vm338_vm0 = vcmp.eq.s32.totalorder %v2570_v5, %v334_v37  ;;  %v2095_v18 = vpack.c.bf16 %v2811_v11, %v2808_v8 }
  0x67   : > { %v2657_v35 = vsel %vm336_vm12, 1.0, %v2355_v34  ;;  %v2662_v36 = vsel %vm337_vm15, 1.0, %v2355_v34  ;;  %v2665_v38 = vsel %vm338_vm0, 1.0, %v2355_v34 }
  0x68   : > { %1781 = vmatprep.mubr.msk.f32.mxu1 %vm469_vm13, %v2657_v35 }
  0x69   : > { %1954 = vmatpush3.bf16.msk.msra.mxu0 %vm2596_vm8, %v2354_v10 }
  0x6a   : > { %1956 = vmatprep.subr.msk.bf16.mxu0 %vm2606_vm11, %v2354_v10 }
  0x6d   : > { %1958 = vmatpush3.bf16.msk.msra.mxu0 %vm2606_vm11, %v2354_v10 }
  0x6e   : > { %1960 = vmatprep.subr.msk.bf16.mxu0 %vm2616_vm14, %v2354_v10 }
  0x71   : > { %1962 = vmatpush3.bf16.msk.msra.mxu0 %vm2616_vm14, %v2354_v10 }
  0x72   : > { %1964 = vmatprep.subr.msk.bf16.mxu0 %vm2626_vm1, %v2354_v10 }
  0x75   : > { %1966 = vmatpush3.bf16.msk.msra.mxu0 %vm2626_vm1, %v2354_v10 }
  0x76   : > { %1968 = vmatprep.subr.msk.bf16.mxu0 %vm2636_vm6, %v2354_v10 }
  0x79   : > { %1970 = vmatpush3.bf16.msk.msra.mxu0 %vm2636_vm6, %v2354_v10 }
  0x7a   : > { %1972 = vmatprep.subr.msk.bf16.mxu0 %vm2643_vm10, %v2354_v10 }
  0x7d   : > { %1974 = vmatpush3.bf16.msk.msra.mxu0 %vm2643_vm10, %v2354_v10 }
  0x7e   : > { %2016 = vmatprep.subr.bf16.mxu0 %v2015_v41 }
  0xe6   : > { %v349_v42 = vpop.xlane.xlu0 %348  ;;  %v353_v43 = vpop.xlane.xlu1 %352 }
  0xea   : > { %v351_v44 = vpop.xlane.xlu0 %350  ;;  %v355_v46 = vpop.xlane.xlu1 %354 }
  0xeb   : > { %v356_v45 = vadd.f32 %v351_v44, %v349_v42 }
  0xed   : > { %v357_v47 = vadd.f32 %v356_v45, %v353_v43 }
  0xef   : > { %v358_v48 = vadd.f32 %v357_v47, %v355_v46 }
  0xf1   : > { %v359_v49 = vrot.slane %v358_v48, 4 }
  0xf3   : > { %v360_v50 = vadd.f32 %v359_v49, %v358_v48 }
  0xf5   : > { %v361_v51 = vrot.slane %v360_v50, 2 }
  0xf7   : > { %v362_v52 = vadd.f32 %v361_v51, %v360_v50 }
  0xf9   : > { %v363_v53 = vrot.slane %v362_v52, 1 }
  0xfb   : > { %v364_v54 = vadd.f32 %v363_v53, %v362_v52 }
  0xfd   : > { %v365_v55 = vmul.f32 0.00024414063, %v364_v54 }
  0xff   : > { %v366_v56 = vmax.f32 %v365_v55, 1.1920929e-07 }
 0x101   : > { %2168 = vrcp.f32 %v366_v56 }
 0x10b   : > { %v2169_v57 = vpop.eup %2168 }
 0x10c   : > { %v2682_v60 = vmul.f32 %v2169_v57, %v2558_v0  ;;  %v2685_v61 = vmul.f32 %v2169_v57, %v2564_v2  ;;  %v2688_v62 = vmul.f32 %v2169_v57, %v2560_v1  ;;  %v2691_v63 = vmul.f32 %v2169_v57, %v2566_v3  ;;  %v2747_v3 = vld [vmem:[%s2552_s13 + $0x20] sm:$0xff] }
 0x10d   : > { %v335_v1 = vadd.s32 1, %v2580_v12  ;;  %v2055_v14 = vpack.c.bf16 %v2802_v7, %v2747_v3 }
 0x10e   : > { %1767 = vmatprep.mubr.f32.mxu0 %v2682_v60  ;;  %v1975_v4 = vpack.c.bf16 %v2685_v61, %v2682_v60  ;;  %v1979_v0 = vpack.c.bf16 %v2691_v63, %v2688_v62 }
 0x10f   : > { %1768 = vmatmul.mubr.f32.vlgmr.msra.gmra.mrb[0].mxu0 %v2685_v61  ;;  %vm339_vm3 = vcmp.eq.s32.totalorder %v2570_v5, %v335_v1 }
 0x110   : > { %1770 = vmatprep.mubr.f32.mxu0 %v2688_v62  ;;  %1976 = vmatprep.subr.bf16.mxu1 %v1975_v4  ;;  %v2719_v2 = vsel %vm339_vm3, 1.0, %v2355_v34 }
 0x111   : > { %1978 = vmatpush3.bf16.msra.mxu1 %v1975_v4  ;;  %2018 = vmatpush3.bf16.msra.mxu0 %v2015_v41 }
 0x112   : > { %1980 = vmatprep.subr.bf16.mxu1 %v1979_v0  ;;  %2020 = vmatprep.subr.bf16.mxu0 %v2019_v6 }
 0x113   : > { %1771 = vmatmul.mubr.f32.gmra.mrb[2].mxu0 %v2691_v63 }
 0x114   : > { %1833 = vmatprep.mubr.msk.f32.mxu0 %vm469_vm13, %v2657_v35 }
 0x115   : > { %1982 = vmatpush3.bf16.msra.mxu1 %v1979_v0  ;;  %2022 = vmatpush3.bf16.msra.mxu0 %v2019_v6 }
 0x116   : > { %1984 = vmatprep.subr.msk.bf16.mxu1 %vm2573_vm2, %v2354_v10  ;;  %2024 = vmatprep.subr.msk.bf16.mxu0 %vm2573_vm2, %v2354_v10 }
 0x118   : > { %1782 = vmatmul.mubr.msk.f32.vlgmr.msra.gmra.mrb[0].mxu1 %vm469_vm13, %v2662_v36  ;;  %1834 = vmatmul.mubr.msk.f32.vlgmr.msra.gmra.mrb[4].mxu0 %vm469_vm13, %v2662_v36 }
 0x119   : > { %1784 = vmatprep.mubr.msk.f32.mxu1 %vm469_vm13, %v2665_v38  ;;  %1986 = vmatpush3.bf16.msk.msra.mxu1 %vm2573_vm2, %v2354_v10 }
 0x11a   : > { %1988 = vmatprep.subr.msk.bf16.mxu1 %vm2586_vm5, %v2354_v10  ;;  %2026 = vmatpush3.bf16.msk.msra.mxu0 %vm2573_vm2, %v2354_v10 }
 0x11b   : > { %2028 = vmatprep.subr.msk.bf16.mxu0 %vm2586_vm5, %v2354_v10  ;;  %1836 = vmatprep.mubr.msk.f32.mxu0 %vm469_vm13, %v2665_v38 }
 0x11c   : > { %1785 = vmatmul.mubr.msk.f32.gmra.mrb[2].mxu1 %vm469_vm13, %v2719_v2  ;;  %1837 = vmatmul.mubr.msk.f32.gmra.mrb[6].mxu0 %vm469_vm13, %v2719_v2 }
 0x11d   : > { %1990 = vmatpush3.bf16.msk.msra.mxu1 %vm2586_vm5, %v2354_v10  ;;  %1819 = vmatprep.mubr.f32.mxu1 %v2668_v39 }
 0x11e   : > { %1992 = vmatprep.subr.msk.bf16.mxu1 %vm2596_vm8, %v2354_v10  ;;  %2030 = vmatpush3.bf16.msk.msra.mxu0 %vm2586_vm5, %v2354_v10 }
 0x11f   : > { %2032 = vmatprep.subr.msk.bf16.mxu0 %vm2596_vm8, %v2354_v10  ;;  %1871 = vmatprep.mubr.f32.mxu0 %v2747_v3 }
 0x121   : > { %1994 = vmatpush3.bf16.msk.msra.mxu1 %vm2596_vm8, %v2354_v10 }
 0x122   : > { %1996 = vmatprep.subr.msk.bf16.mxu1 %vm2606_vm11, %v2354_v10  ;;  %2034 = vmatpush3.bf16.msk.msra.mxu0 %vm2596_vm8, %v2354_v10 }
 0x123   : > { %2036 = vmatprep.subr.msk.bf16.mxu0 %vm2606_vm11, %v2354_v10 }
 0x125   : > { %1998 = vmatpush3.bf16.msk.msra.mxu1 %vm2606_vm11, %v2354_v10 }
 0x126   : > { %2000 = vmatprep.subr.msk.bf16.mxu1 %vm2616_vm14, %v2354_v10  ;;  %2038 = vmatpush3.bf16.msk.msra.mxu0 %vm2606_vm11, %v2354_v10 }
 0x127   : > { %2040 = vmatprep.subr.msk.bf16.mxu0 %vm2616_vm14, %v2354_v10 }
 0x129   : > { %2002 = vmatpush3.bf16.msk.msra.mxu1 %vm2616_vm14, %v2354_v10 }
 0x12a   : > { %2004 = vmatprep.subr.msk.bf16.mxu1 %vm2626_vm1, %v2354_v10  ;;  %2042 = vmatpush3.bf16.msk.msra.mxu0 %vm2616_vm14, %v2354_v10 }
 0x12b   : > { %2044 = vmatprep.subr.msk.bf16.mxu0 %vm2626_vm1, %v2354_v10 }
 0x12d   : > { %2006 = vmatpush3.bf16.msk.msra.mxu1 %vm2626_vm1, %v2354_v10 }
 0x12e   : > { %2008 = vmatprep.subr.msk.bf16.mxu1 %vm2636_vm6, %v2354_v10  ;;  %2046 = vmatpush3.bf16.msk.msra.mxu0 %vm2626_vm1, %v2354_v10 }
 0x12f   : > { %2048 = vmatprep.subr.msk.bf16.mxu0 %vm2636_vm6, %v2354_v10 }
 0x131   : > { %2010 = vmatpush3.bf16.msk.msra.mxu1 %vm2636_vm6, %v2354_v10 }
 0x132   : > { %2012 = vmatprep.subr.msk.bf16.mxu1 %vm2643_vm10, %v2354_v10  ;;  %2050 = vmatpush3.bf16.msk.msra.mxu0 %vm2636_vm6, %v2354_v10 }
 0x133   : > { %2052 = vmatprep.subr.msk.bf16.mxu0 %vm2643_vm10, %v2354_v10 }
 0x135   : > { %2014 = vmatpush3.bf16.msk.msra.mxu1 %vm2643_vm10, %v2354_v10 }
 0x136   : > { %2056 = vmatprep.subr.bf16.mxu1 %v2055_v14  ;;  %2054 = vmatpush3.bf16.msk.msra.mxu0 %vm2643_vm10, %v2354_v10 }
 0x137   : > { %2096 = vmatprep.subr.bf16.mxu0 %v2095_v18 }
 0x138   : > { %1820 = vmatmul.mubr.f32.vlgmr.msra.gmra.mrb[4].mxu1 %v2671_v40 }
 0x139   : > { %2058 = vmatpush3.bf16.msra.mxu1 %v2055_v14  ;;  %1822 = vmatprep.mubr.f32.mxu1 %v2676_v58 }
 0x13a   : > { %2060 = vmatprep.subr.bf16.mxu1 %v2059_v23  ;;  %1872 = vmatmul.mubr.f32.vlgmr.msra.gmra.mrb[8].mxu0 %v2802_v7 }
 0x13b   : > { %2098 = vmatpush3.bf16.msra.mxu0 %v2095_v18  ;;  %1874 = vmatprep.mubr.f32.mxu0 %v2825_v15 }
 0x13c   : > { %1823 = vmatmul.mubr.f32.gmra.mrb[6].mxu1 %v2679_v59  ;;  %2100 = vmatprep.subr.bf16.mxu0 %v2099_v24 }
 0x13d   : > { %2062 = vmatpush3.bf16.msra.mxu1 %v2059_v23  ;;  %1885 = vmatprep.mubr.msk.f32.mxu1 %vm469_vm13, %v2657_v35 }
 0x13e   : > { %2064 = vmatprep.subr.msk.bf16.mxu1 %vm2573_vm2, %v2354_v10  ;;  %1875 = vmatmul.mubr.f32.gmra.mrb[10].mxu0 %v2828_v17 }
 0x13f   : > { %2102 = vmatpush3.bf16.msra.mxu0 %v2099_v24  ;;  %1937 = vmatprep.mubr.msk.f32.mxu0 %vm469_vm13, %v2657_v35 }
 0x140   : > { %1886 = vmatmul.mubr.msk.f32.vlgmr.msra.gmra.mrb[8].mxu1 %vm469_vm13, %v2662_v36 }
 0x141   : > { %2066 = vmatpush3.bf16.msk.msra.mxu1 %vm2573_vm2, %v2354_v10  ;;  %1888 = vmatprep.mubr.msk.f32.mxu1 %vm469_vm13, %v2665_v38  ;;  %vm282_vm2 = vcmp.lt.s32.totalorder %v2570_v5, 127 }
 0x142   : > { %2068 = vmatprep.subr.msk.bf16.mxu1 %vm2586_vm5, %v2354_v10  ;;  %1938 = vmatmul.mubr.msk.f32.vlgmr.msra.gmra.mrb[12].mxu0 %vm469_vm13, %v2662_v36 }
 0x143   : > { %1940 = vmatprep.mubr.msk.f32.mxu0 %vm469_vm13, %v2665_v38 }
 0x144   : > { %1889 = vmatmul.mubr.msk.f32.gmra.mrb[10].mxu1 %vm469_vm13, %v2719_v2 }
 0x145   : > { %2070 = vmatpush3.bf16.msk.msra.mxu1 %vm2586_vm5, %v2354_v10  ;;  %1923 = vmatprep.mubr.f32.mxu1 %v2808_v8  ;;  %vm286_vm5 = vcmp.lt.s32.totalorder %v2580_v12, 31 }
 0x146   : > { %2072 = vmatprep.subr.msk.bf16.mxu1 %vm2596_vm8, %v2354_v10  ;;  %1941 = vmatmul.mubr.msk.f32.gmra.mrb[14].mxu0 %vm469_vm13, %v2719_v2 }
 0x149   : > { %2074 = vmatpush3.bf16.msk.msra.mxu1 %vm2596_vm8, %v2354_v10 }
 0x14a   : > { %2076 = vmatprep.subr.msk.bf16.mxu1 %vm2606_vm11, %v2354_v10 }
 0x14d   : > { %2078 = vmatpush3.bf16.msk.msra.mxu1 %vm2606_vm11, %v2354_v10 }
 0x14e   : > { %2080 = vmatprep.subr.msk.bf16.mxu1 %vm2616_vm14, %v2354_v10 }
 0x151   : > { %2082 = vmatpush3.bf16.msk.msra.mxu1 %vm2616_vm14, %v2354_v10 }
 0x152   : > { %2084 = vmatprep.subr.msk.bf16.mxu1 %vm2626_vm1, %v2354_v10 }
 0x155   : > { %2086 = vmatpush3.bf16.msk.msra.mxu1 %vm2626_vm1, %v2354_v10 }
 0x156   : > { %2088 = vmatprep.subr.msk.bf16.mxu1 %vm2636_vm6, %v2354_v10 }
 0x159   : > { %2090 = vmatpush3.bf16.msk.msra.mxu1 %vm2636_vm6, %v2354_v10 }
 0x15a   : > { %2092 = vmatprep.subr.msk.bf16.mxu1 %vm2643_vm10, %v2354_v10 }
 0x15d   : > { %2094 = vmatpush3.bf16.msk.msra.mxu1 %vm2643_vm10, %v2354_v10 }
 0x160   : > { %1924 = vmatmul.mubr.f32.vlgmr.msra.gmra.mrb[12].mxu1 %v2811_v11 }
 0x161   : > { %1926 = vmatprep.mubr.f32.mxu1 %v2839_v20 }
 0x164   : > { %1927 = vmatmul.mubr.f32.gmra.mrb[14].mxu1 %v2842_v21 }
 0x1e2   : > { %v1769_v9 = vpop.f32.mrb[0].mxu0 }
 0x1e3   : > { %v438_v13 = vpop.f32.mrb[1].mxu0  ;;  %v458_v16 = vsub.f32 %v2685_v61, %v1769_v9 }
 0x1e4   : > { %v457_v19 = vsub.f32 %v2682_v60, %v438_v13 }
 0x1e5   : > { %v462_v26 = vand.u32 2147483647, %v458_v16 }
 0x1e6   : > { %v1772_v22 = vpop.f32.mrb[2].mxu0  ;;  %v461_v27 = vand.u32 2147483647, %v457_v19 }
 0x1e7   : > { %v448_v25 = vpop.f32.mrb[3].mxu0  ;;  %v460_v10 = vsub.f32 %v2691_v63, %v1772_v22  ;;  %v466_v33 = vsel %vm282_vm2, %v462_v26, 0.0 }
 0x1e8   : > { %v459_v28 = vsub.f32 %v2688_v62, %v448_v25  ;;  %v465_v38 = vsel %vm282_vm2, %v461_v27, 0.0  ;;  %v580_v44 = vmul.f32 %v466_v33, %v466_v33 }
 0x1e9   : > { %v464_v36 = vand.u32 2147483647, %v460_v10  ;;  %v579_v55 = vmul.f32 %v465_v38, %v465_v38 }
 0x1ea   : > { %v463_v41 = vand.u32 2147483647, %v459_v28 }
 0x1eb   : > { %v1783_v29 = vpop.f32.mrb[0].mxu1  ;;  %v2930_v30 = vpop.f32.mrb[4].mxu0 }
 0x1ec   : > { %v568_v31 = vsub.f32 %v2685_v61, %v1783_v29  ;;  %v548_v32 = vpop.f32.mrb[1].mxu1  ;;  %v2935_v34 = vpop.f32.mrb[5].mxu0  ;;  %v467_v6 = vsel %vm282_vm2, %v463_v41, 0.0 }
 0x1ed   : > { %v567_v35 = vsub.f32 %v2682_v60, %v548_v32  ;;  %v581_v9 = vmul.f32 %v467_v6, %v467_v6 }
 0x1ee   : > { %v572_v37 = vand.u32 2147483647, %v568_v31 }
 0x1ef   : > { %v571_v42 = vand.u32 2147483647, %v567_v35  ;;  %v1786_v43 = vpop.f32.mrb[2].mxu1  ;;  %v1838_v45 = vpop.f32.mrb[6].mxu0 }
 0x1f0   : > { %v584_v46 = vmul.f32 %v572_v37, %v572_v37  ;;  %v570_v47 = vsub.f32 %v2691_v63, %v1786_v43  ;;  %v558_v48 = vpop.f32.mrb[3].mxu1  ;;  %v1304_v49 = vadd.f32 %v572_v37, %v466_v33  ;;  %v820_v50 = vsub.f32 %v2679_v59, %v1838_v45  ;;  %v2943_v51 = vpop.f32.mrb[7].mxu0 }
 0x1f1   : > { %v583_v52 = vmul.f32 %v571_v42, %v571_v42  ;;  %v569_v53 = vsub.f32 %v2688_v62, %v558_v48  ;;  %v1303_v54 = vadd.f32 %v571_v42, %v465_v38  ;;  %v468_v63 = vsel %vm282_vm2, %v464_v36, 0.0 }
 0x1f2   : > { %v574_v56 = vand.u32 2147483647, %v570_v47  ;;  %1309 = vadd.xlane.f32.xlu1 %v1304_v49  ;;  %v588_v57 = vadd.f32 %v584_v46, %v580_v44  ;;  %v824_v60 = vand.u32 2147483647, %v820_v50  ;;  %v582_v24 = vmul.f32 %v468_v63, %v468_v63 }
 0x1f3   : > { %v573_v61 = vand.u32 2147483647, %v569_v53  ;;  %1307 = vadd.xlane.f32.xlu0 %v1303_v54  ;;  %v587_v4 = vadd.f32 %v583_v52, %v579_v55  ;;  %v818_v54 = vsub.f32 %v2671_v40, %v2930_v30 }
 0x1f4   : > { %v592_v0 = vmax.f32 %v588_v57, 1.1920929e-07  ;;  %v578_v1 = vsel %vm286_vm5, %v574_v56, 0.0  ;;  %v2954_v62 = vsel %vm286_vm5, %v824_v60, 0.0  ;;  %v817_v57 = vsub.f32 %v2668_v39, %v2935_v34 }
 0x1f5   : > { %v585_v2 = vmul.f32 %v573_v61, %v573_v61  ;;  %v591_v14 = vmax.f32 %v587_v4, 1.1920929e-07  ;;  %v586_v18 = vmul.f32 %v578_v1, %v578_v1  ;;  %v1306_v23 = vadd.f32 %v578_v1, %v468_v63 }
 0x1f6   : > { %2170 = vrsqrt.f32 %v592_v0  ;;  %v1305_v16 = vadd.f32 %v573_v61, %v467_v6  ;;  %vm604_vm8 = vcmp.eq.f32.partialorder %v592_v0, inf  ;;  %v607_v28 = vand.u32 2147483648, %v592_v0 }
 0x1f7   : > { %2172 = vrsqrt.f32 %v591_v14  ;;  %1313 = vadd.xlane.f32.xlu1 %v1306_v23  ;;  %v590_v13 = vadd.f32 %v586_v18, %v582_v24  ;;  %v589_v19 = vadd.f32 %v585_v2, %v581_v9  ;;  %vm606_vm11 = vcmp.eq.f32.partialorder %v592_v0, 0.0 }
 0x1f8   : > { %1311 = vadd.xlane.f32.xlu0 %v1305_v16  ;;  %vm597_vm14 = vcmp.eq.f32.partialorder %v591_v14, inf  ;;  %v600_v32 = vand.u32 2147483648, %v591_v14  ;;  %vm599_vm1 = vcmp.eq.f32.partialorder %v591_v14, 0.0  ;;  %v822_v30 = vand.u32 2147483647, %v818_v54 }
 0x1f9   : > { %v594_v22 = vmax.f32 %v590_v13, 1.1920929e-07  ;;  %v593_v25 = vmax.f32 %v589_v19, 1.1920929e-07  ;;  %v821_v24 = vand.u32 2147483647, %v817_v57 }
 0x1fb   : > { %2174 = vrsqrt.f32 %v594_v22  ;;  %vm618_vm4 = vcmp.eq.f32.partialorder %v594_v22, inf  ;;  %v621_v42 = vand.u32 2147483648, %v594_v22  ;;  %vm620_vm6 = vcmp.eq.f32.partialorder %v594_v22, 0.0 }
 0x1fc   : > { %2176 = vrsqrt.f32 %v593_v25  ;;  %vm611_vm7 = vcmp.eq.f32.partialorder %v593_v25, inf  ;;  %v614_v45 = vand.u32 2147483648, %v593_v25  ;;  %vm613_vm9 = vcmp.eq.f32.partialorder %v593_v25, 0.0 }
 0x200   : > { %v2171_v26 = vpop.eup %2170 }
 0x201   : > { %v2173_v27 = vpop.eup %2172  ;;  %v603_v10 = vmul.f32 %v2171_v26, %v592_v0 }
 0x202   : > { %v596_v29 = vmul.f32 %v2173_v27, %v591_v14 }
 0x203   : > { %v605_v31 = vsel %vm604_vm8, %v592_v0, %v603_v10 }
 0x204   : > { %v608_v33 = vsel %vm606_vm11, %v607_v28, %v605_v31  ;;  %v598_v35 = vsel %vm597_vm14, %v591_v14, %v596_v29 }
 0x205   : > { %v601_v36 = vsel %vm599_vm1, %v600_v32, %v598_v35  ;;  %624 = vst [vmem:[%s2957_s26 + $0x8] sm:$0xff] %v608_v33  ;;  %v2175_v37 = vpop.eup %2174  ;;  %v819_v33 = vsub.f32 %v2676_v58, %v2943_v51 }
 0x206   : > { %623 = vst [vmem:[%s2957_s26] sm:$0xff] %v601_v36  ;;  %v2177_v38 = vpop.eup %2176  ;;  %v617_v41 = vmul.f32 %v2175_v37, %v594_v22 }
 0x207   : > { %v610_v43 = vmul.f32 %v2177_v38, %v593_v25 }
 0x208   : > { %v619_v44 = vsel %vm618_vm4, %v594_v22, %v617_v41 }
 0x209   : > { %v622_v46 = vsel %vm620_vm6, %v621_v42, %v619_v44  ;;  %v612_v47 = vsel %vm611_vm7, %v593_v25, %v610_v43 }
 0x20a   : > { %v615_v48 = vsel %vm613_vm9, %v614_v45, %v612_v47  ;;  %626 = vst [vmem:[%s2957_s26 + $0x18] sm:$0xff] %v622_v46 }
 0x20b   : > { %v1821_v49 = vpop.f32.mrb[4].mxu1  ;;  %625 = vst [vmem:[%s2957_s26 + $0x10] sm:$0xff] %v615_v48 }
 0x20c   : > { %v717_v50 = vsub.f32 %v2671_v40, %v1821_v49  ;;  %v697_v52 = vpop.f32.mrb[5].mxu1 }
 0x20d   : > { %v716_v53 = vsub.f32 %v2668_v39, %v697_v52  ;;  %v1873_v55 = vpop.f32.mrb[8].mxu0 }
 0x20e   : > { %v721_v56 = vand.u32 2147483647, %v717_v50  ;;  %v924_v60 = vsub.f32 %v2802_v7, %v1873_v55  ;;  %v904_v61 = vpop.f32.mrb[9].mxu0  ;;  %v823_v50 = vand.u32 2147483647, %v819_v33 }
 0x20f   : > { %v720_v4 = vand.u32 2147483647, %v716_v53  ;;  %v1824_v63 = vpop.f32.mrb[6].mxu1  ;;  %v923_v6 = vsub.f32 %v2747_v3, %v904_v61 }
 0x210   : > { %v725_v0 = vsel %vm282_vm2, %v721_v56, 0.0  ;;  %v719_v1 = vsub.f32 %v2679_v59, %v1824_v63  ;;  %v707_v2 = vpop.f32.mrb[7].mxu1  ;;  %v928_v14 = vand.u32 2147483647, %v924_v60 }
 0x211   : > { %v724_v40 = vsel %vm282_vm2, %v720_v4, 0.0  ;;  %v718_v39 = vsub.f32 %v2676_v58, %v707_v2  ;;  %v927_v34 = vand.u32 2147483647, %v923_v6  ;;  %v1876_v18 = vpop.f32.mrb[10].mxu0 }
 0x212   : > { %v723_v23 = vand.u32 2147483647, %v719_v1  ;;  %v932_v9 = vsel %vm282_vm2, %v928_v14, 0.0  ;;  %v926_v13 = vsub.f32 %v2828_v17, %v1876_v18  ;;  %v914_v16 = vpop.f32.mrb[11].mxu0 }
 0x213   : > { %v722_v19 = vand.u32 2147483647, %v718_v39  ;;  %v1887_v59 = vpop.f32.mrb[8].mxu1  ;;  %v2980_v22 = vadd.f32 %v932_v9, %v725_v0  ;;  %v931_v25 = vsel %vm282_vm2, %v927_v34, 0.0  ;;  %v925_v26 = vsub.f32 %v2825_v15, %v914_v16 }
 0x214   : > { %v727_v27 = vsel %vm282_vm2, %v723_v23, 0.0  ;;  %v1025_v10 = vsub.f32 %v2802_v7, %v1887_v59  ;;  %v1005_v28 = vpop.f32.mrb[9].mxu1  ;;  %v2988_v29 = vadd.f32 %v931_v25, %v724_v40  ;;  %v930_v31 = vand.u32 2147483647, %v926_v13 }
 0x215   : > { %v726_v32 = vsel %vm282_vm2, %v722_v19, 0.0  ;;  %v1024_v35 = vsub.f32 %v2747_v3, %v1005_v28  ;;  %v929_v36 = vand.u32 2147483647, %v925_v26  ;;  %v1939_v37 = vpop.f32.mrb[12].mxu0 }
 0x216   : > { %v1029_v38 = vand.u32 2147483647, %v1025_v10  ;;  %v934_v41 = vsel %vm282_vm2, %v930_v31, 0.0  ;;  %v1232_v7 = vsub.f32 %v2811_v11, %v1939_v37  ;;  %v1212_v42 = vpop.f32.mrb[13].mxu0 }
 0x217   : > { %v1028_v43 = vand.u32 2147483647, %v1024_v35  ;;  %v1890_v44 = vpop.f32.mrb[10].mxu1  ;;  %v3000_v45 = vadd.f32 %v934_v41, %v727_v27  ;;  %v933_v58 = vsel %vm282_vm2, %v929_v36, 0.0  ;;  %v1231_v3 = vsub.f32 %v2808_v8, %v1212_v42 }
 0x218   : > { %v1037_v51 = vadd.f32 %v1029_v38, %v822_v30  ;;  %v1027_v46 = vsub.f32 %v2828_v17, %v1890_v44  ;;  %v1015_v47 = vpop.f32.mrb[11].mxu1  ;;  %v3013_v48 = vadd.f32 %v933_v58, %v726_v32  ;;  %v1236_v49 = vand.u32 2147483647, %v1232_v7 }
 0x219   : > { %v1036_v52 = vadd.f32 %v1028_v43, %v821_v24  ;;  %v1026_v53 = vsub.f32 %v2825_v15, %v1015_v47  ;;  %v1235_v54 = vand.u32 2147483647, %v1231_v3  ;;  %v1942_v55 = vpop.f32.mrb[14].mxu0 }
 0x21a   : > { %v1031_v56 = vand.u32 2147483647, %v1027_v46  ;;  %v1244_v57 = vadd.f32 %v1236_v49, %v1037_v51  ;;  %v1234_v17 = vsub.f32 %v2842_v21, %v1942_v55  ;;  %v1222_v60 = vpop.f32.mrb[15].mxu0 }
 0x21b   : > { %2259 = shalt.err (!%p2256_p11)
}
 0x21c   : > { %s2260_s23 = scalar_lea.hbm %s3010_s25, 512  ;;  %s2264_s13 = scalar_lea.hbm %s3130_s2, 1024 }
 0x21d   : > { %p2261_p3 = scmp.ne.s32.totalorder %s3010_s25, %s2260_s23  ;;  %p2265_p2 = scmp.lt.u32.totalorder %s3010_s25, %s3130_s2 }
 0x21e   : > { %p2266_p4 = scmp.lt.u32.totalorder %s2264_s13, %s2260_s23  ;;  %p2268_p13 = scmp.lt.u32.totalorder %s2260_s23, %s3010_s25 }
 0x21f   : > { %p2262_p8 = pnand %p2261_p3, %p3158_p1 }
 0x220   : > { %p2267_p6 = por %p2266_p4, %p2265_p2 }
 0x221   : > { %p2263_p0 = pneg %p2262_p8 }
 0x222   : > { %p2269_p12 = por %p2268_p13, %p2267_p6 }
 0x224   : > { %p2270_p10 = pnand %p2269_p12, %p2263_p0 }
 0x226   : > { %2273 = shalt.err (!%p2270_p10)
}
 0x227   : > { %s2357_s8 = smov 128   ;;  %s2358_s5 = smov 8   ;;  %v1030_v15 = vand.u32 2147483647, %v1026_v53  ;;  %v1243_v61 = vadd.f32 %v1235_v54, %v1036_v52  ;;  %v1233_v4 = vsub.f32 %v2839_v20, %v1222_v60  ;;  %v1035_v63 = vsel %vm286_vm5, %v1031_v56, 0.0 }
 0x228   : > { %2110 = dma.vmem_to_hbm [thread:$0]  (%p3158_p1), %s3015_s30, 512, %s3010_s25, %s1326_s14, %s2357_s8, %s2357_s8, %s2358_s5   ;;  %v1238_v6 = vand.u32 2147483647, %v1234_v17  ;;  %v1039_v0 = vadd.f32 %v1035_v63, %v2954_v62  ;;  %v1252_v13 = vmul.f32 0.33333334, %v1244_v57 }
 0x229   : > { %v1038_v1 = vadd.f32 %v1030_v15, %v823_v50  ;;  %v1237_v2 = vand.u32 2147483647, %v1233_v4  ;;  %v1251_v19 = vmul.f32 0.33333334, %v1243_v61  ;;  %s266_s30 = scalar_lea.vmem [#allocation8], %s2542_s22  ;;  %s3074_s12 = scalar_lea.hbm %s3131_s3, %s1621_s20 }
 0x22a   : > { %v1242_v14 = vsel %vm286_vm5, %v1238_v6, 0.0  ;;  %v1260_v28 = vmul.f32 %v1252_v13, %v1252_v13  ;;  %s1363_s25 = sshll.u32 %s266_s30, 4  ;;  %s1331_s7 = scalar_lea.sflag [#allocation9], %s2539_s10  ;;  %s3076_s25 = int_to_ptr.vmem [resolvable:$true] %s1363_s25 }
 0x22b   : > { %v1246_v40 = vadd.f32 %v1242_v14, %v1039_v0  ;;  %v1245_v30 = vadd.f32 %v1237_v2, %v1038_v1  ;;  %v1259_v33 = vmul.f32 %v1251_v19, %v1251_v19  ;;  %s2274_s11 = scalar_lea.vmem %s3076_s25, 512  ;;  %s2359_s23 = smov [#allocation8]  }
 0x22c   : > { %p2275_p5 = scmp.ne.s32.totalorder %s3076_s25, %s2274_s11  ;;  %s2278_s29 = sshll.u32 %s2359_s23, 4  ;;  %s2279_s29 = int_to_ptr.vmem [resolvable:$false] %s2278_s29 }
 0x22d   : > { %v1253_v38 = vmul.f32 0.33333334, %v1245_v30  ;;  %s2280_s9 = scalar_lea.vmem %s2279_s29, 1024  ;;  %p2281_p11 = scmp.lt.s32.totalorder %s3076_s25, %s2279_s29 }
 0x22e   : > { %p2276_p7 = pnand %p2275_p5, %p3158_p1  ;;  %p2282_p3 = scmp.lt.s32.totalorder %s2280_s9, %s2274_s11 }
 0x22f   : > { %v1261_v51 = vmul.f32 %v1253_v38, %v1253_v38 }
 0x230   : > { %p2277_p9 = pneg %p2276_p7  ;;  %p2283_p8 = por %p2282_p3, %p2281_p11 }
 0x232   : > { %p2284_p0 = pnand %p2283_p8, %p2277_p9 }
 0x233   : > { %v1925_v39 = vpop.f32.mrb[12].mxu1 }
 0x234   : > { %v1131_v34 = vsub.f32 %v2811_v11, %v1925_v39  ;;  %v1111_v18 = vpop.f32.mrb[13].mxu1 }
 0x235   : > { %v1130_v23 = vsub.f32 %v2808_v8, %v1111_v18 }
 0x236   : > { %v1135_v24 = vand.u32 2147483647, %v1131_v34 }
 0x237   : > { %v1134_v9 = vand.u32 2147483647, %v1130_v23  ;;  %v1928_v16 = vpop.f32.mrb[14].mxu1 }
 0x238   : > { %v1139_v62 = vsel %vm282_vm2, %v1135_v24, 0.0  ;;  %v1133_v59 = vsub.f32 %v2842_v21, %v1928_v16  ;;  %v1121_v12 = vpop.f32.mrb[15].mxu1  ;;  %v1254_v21 = vmul.f32 0.33333334, %v1246_v40 }
 0x239   : > { %v1143_v25 = vadd.f32 %v1139_v62, %v2980_v22  ;;  %v1138_v26 = vsel %vm282_vm2, %v1134_v9, 0.0  ;;  %v1132_v11 = vsub.f32 %v2839_v20, %v1121_v12 }
 0x23a   : > { %v1142_v8 = vadd.f32 %v1138_v26, %v2988_v29  ;;  %v1137_v27 = vand.u32 2147483647, %v1133_v59  ;;  %v1262_v3 = vmul.f32 %v1254_v21, %v1254_v21 }
 0x23b   : > { %v1248_v10 = vmul.f32 0.33333334, %v1143_v25  ;;  %v1136_v31 = vand.u32 2147483647, %v1132_v11 }
 0x23c   : > { %v1247_v32 = vmul.f32 0.33333334, %v1142_v8  ;;  %v1141_v35 = vsel %vm282_vm2, %v1137_v27, 0.0 }
 0x23d   : > { %v1256_v36 = vmul.f32 %v1248_v10, %v1248_v10  ;;  %v1145_v22 = vadd.f32 %v1141_v35, %v3000_v45  ;;  %v1140_v37 = vsel %vm282_vm2, %v1136_v31, 0.0 }
 0x23e   : > { %v1255_v20 = vmul.f32 %v1247_v32, %v1247_v32  ;;  %v1144_v29 = vadd.f32 %v1140_v37, %v3013_v48 }
 0x23f   : > { %v1264_v41 = vadd.f32 %v1260_v28, %v1256_v36  ;;  %v1250_v7 = vmul.f32 0.33333334, %v1145_v22 }
 0x240   : > { %v1263_v42 = vadd.f32 %v1259_v33, %v1255_v20  ;;  %v1249_v43 = vmul.f32 0.33333334, %v1144_v29 }
 0x241   : > { %v1268_v44 = vmax.f32 %v1264_v41, 1.1920929e-07  ;;  %v1258_v58 = vmul.f32 %v1250_v7, %v1250_v7 }
 0x242   : > { %v1267_v46 = vmax.f32 %v1263_v42, 1.1920929e-07  ;;  %v1257_v47 = vmul.f32 %v1249_v43, %v1249_v43 }
 0x243   : > { %2178 = vrsqrt.f32 %v1268_v44  ;;  %v1266_v45 = vadd.f32 %v1262_v3, %v1258_v58  ;;  %vm1280_vm10 = vcmp.eq.f32.partialorder %v1268_v44, inf  ;;  %v1283_v52 = vand.u32 2147483648, %v1268_v44 }
 0x244   : > { %2180 = vrsqrt.f32 %v1267_v46  ;;  %v1265_v49 = vadd.f32 %v1261_v51, %v1257_v47  ;;  %vm1282_vm12 = vcmp.eq.f32.partialorder %v1268_v44, 0.0  ;;  %vm1273_vm13 = vcmp.eq.f32.partialorder %v1267_v46, inf }
 0x245   : > { %v1270_v5 = vmax.f32 %v1266_v45, 1.1920929e-07  ;;  %v1276_v55 = vand.u32 2147483648, %v1267_v46  ;;  %vm1275_vm15 = vcmp.eq.f32.partialorder %v1267_v46, 0.0 }
 0x246   : > { %v1269_v50 = vmax.f32 %v1265_v49, 1.1920929e-07 }
 0x247   : > { %2182 = vrsqrt.f32 %v1270_v5  ;;  %vm1294_vm0 = vcmp.eq.f32.partialorder %v1270_v5, inf  ;;  %v1297_v4 = vand.u32 2147483648, %v1270_v5  ;;  %vm1296_vm3 = vcmp.eq.f32.partialorder %v1270_v5, 0.0 }
 0x248   : > { %2184 = vrsqrt.f32 %v1269_v50  ;;  %vm1287_vm2 = vcmp.eq.f32.partialorder %v1269_v50, inf  ;;  %v1290_v0 = vand.u32 2147483648, %v1269_v50  ;;  %vm1289_vm5 = vcmp.eq.f32.partialorder %v1269_v50, 0.0 }
 0x24d   : > { %v2179_v48 = vpop.eup %2178 }
 0x24e   : > { %v2181_v53 = vpop.eup %2180  ;;  %v1279_v54 = vmul.f32 %v2179_v48, %v1268_v44 }
 0x24f   : > { %v1272_v56 = vmul.f32 %v2181_v53, %v1267_v46 }
 0x250   : > { %v1281_v57 = vsel %vm1280_vm10, %v1268_v44, %v1279_v54 }
 0x251   : > { %v1274_v17 = vsel %vm1273_vm13, %v1267_v46, %v1272_v56  ;;  %v1284_v60 = vsel %vm1282_vm12, %v1283_v52, %v1281_v57  ;;  %v2183_v61 = vpop.eup %2182 }
 0x252   : > { %v1277_v15 = vsel %vm1275_vm15, %v1276_v55, %v1274_v17  ;;  %1300 = vst [vmem:[%s266_s30 + $0x8] sm:$0xff] %v1284_v60  ;;  %v2185_v63 = vpop.eup %2184  ;;  %v1293_v6 = vmul.f32 %v2183_v61, %v1270_v5 }
 0x253   : > { %1299 = vst [vmem:[%s266_s30] sm:$0xff] %v1277_v15  ;;  %v1286_v1 = vmul.f32 %v2185_v63, %v1269_v50 }
 0x254   : > { %v1295_v2 = vsel %vm1294_vm0, %v1270_v5, %v1293_v6 }
 0x255   : > { %v1288_v14 = vsel %vm1287_vm2, %v1269_v50, %v1286_v1  ;;  %v1298_v40 = vsel %vm1296_vm3, %v1297_v4, %v1295_v2 }
 0x256   : > { %v1291_v30 = vsel %vm1289_vm5, %v1290_v0, %v1288_v14  ;;  %1302 = vst [vmem:[%s266_s30 + $0x18] sm:$0xff] %v1298_v40 }
 0x257   : > { %1301 = vst [vmem:[%s266_s30 + $0x10] sm:$0xff] %v1291_v30 }
 0x258   : > { %2287 = shalt.err (!%p2284_p0)
}
 0x259   : > { %s2288_s20 = scalar_lea.hbm %s3074_s12, 512  ;;  %s2292_s6 = scalar_lea.hbm %s3131_s3, 1024 }
 0x25a   : > { %p2289_p2 = scmp.ne.s32.totalorder %s3074_s12, %s2288_s20  ;;  %p2293_p13 = scmp.lt.u32.totalorder %s3074_s12, %s3131_s3 }
 0x25b   : > { %p2294_p12 = scmp.lt.u32.totalorder %s2292_s6, %s2288_s20  ;;  %p2296_p5 = scmp.lt.u32.totalorder %s2288_s20, %s3074_s12 }
 0x25c   : > { %p2290_p4 = pnand %p2289_p2, %p3158_p1 }
 0x25d   : > { %p2295_p10 = por %p2294_p12, %p2293_p13 }
 0x25e   : > { %p2291_p6 = pneg %p2290_p4 }
 0x25f   : > { %p2297_p7 = por %p2296_p5, %p2295_p10 }
 0x261   : > { %p2298_p9 = pnand %p2297_p7, %p2291_p6 }
 0x263   : > { %2301 = shalt.err (!%p2298_p9)
}
 0x264   : > { %2111 = dma.vmem_to_hbm [thread:$0]  (%p3158_p1), %s3076_s25, 512, %s3074_s12, %s1331_s7, %s2357_s8, %s2357_s8, %s2358_s5  }
 0x265   : > { %p272_p11 = scmp.lt.s32.totalorder %s2406_s19, 1 }
 0x267   : > { %s3166_s19 = smov (!%p272_p11, %s2406_s19), 1 }
 0x268   : > { %s274_s14 = scalar_lea.vmem %s3132_s4, %s3166_s19 }
 0x27f   : > { %v1310_v34 = vpop.xlane.xlu1 %1309 }
 0x280   : > { %v1308_v39 = vpop.xlane.xlu0 %1307 }
 0x281   : > { %v1315_v18 = vadd.f32 %v1310_v34, %v1308_v39 }
 0x284   : > { %v1314_v9 = vpop.xlane.xlu1 %1313 }
 0x285   : > { %v1312_v23 = vpop.xlane.xlu0 %1311 }
 0x286   : > { %v1316_v24 = vadd.f32 %v1315_v18, %v1312_v23 }
 0x288   : > { %v1317_v13 = vadd.f32 %v1316_v24, %v1314_v9 }
 0x28a   : > { %v1318_v16 = vrot.slane %v1317_v13, 4 }
 0x28c   : > { %v1319_v62 = vadd.f32 %v1318_v16, %v1317_v13 }
 0x28e   : > { %v1320_v19 = vrot.slane %v1319_v62, 2 }
 0x290   : > { %v1321_v59 = vadd.f32 %v1320_v19, %v1319_v62 }
 0x292   : > { %v1322_v12 = vrot.slane %v1321_v59, 1 }
 0x294   : > { %v1323_v25 = vadd.f32 %v1322_v12, %v1321_v59 }
 0x296   : > { %1324 = vst [vmem:[%s274_s14] sm:$0x1] %v1323_v25 }
 0x297 PF: > { %s1381_s8 = sand.u32 1, %s2336_s15   ;;  %p3159_p1 = scmp.ne.s32.totalorder %s3138_s28, 0 }
 0x298   : > { %p3160_p3 = scmp.ge.s32.totalorder %s2348_s18, 2  ;;  %s1382_s5 = scalar_lea.sflag [#allocation4], %s1381_s8 }
 0x29a   : > { %p2122_p8 = pnand %p3160_p3, %p3159_p1 }
 0x29c   : > { %2327 = dma.done.wait (!%p2122_p8), %s1382_s5, 512  }
 0x29d   : > { %2329 = vsyncadd (!%p2122_p8), %s1382_s5, 4294966784  ;;  %s1391_s25 = scalar_lea.sflag [#allocation9], %s1381_s8 }
 0x29e   : > { %2331 = dma.done.wait (!%p2122_p8), %s1391_s25, 512  }
 0x29f   : > { %2333 = vsyncadd (!%p2122_p8), %s1391_s25, 4294966784  ;;  %p24_p0 = scmp.ge.s32.totalorder %s2410_s21, 4   ;;  %s3161_s15 = smov %s2340_s16 }
 0x2a0   : > { %s3162_s16 = smov %s2344_s17  ;;  %s3163_s17 = smov %s2422_s24 }
 0x2a1   : > { %s3164_s18 = smov %s2410_s21  ;;  %26 = sbr.rel (!%p24_p0) target bundleno = 9 (0x9), region = 117 }
 0x2a8   :  { %1402 = vsyncpa [#allocation3], 1 }
 0x2a9   :  { %1404 = vsyncpa [#allocation3 + $0x1], 1 }
 0x2aa   :  { %1405 = vsyncpa [#allocation6], 1 }
 0x2ab   :  { %1407 = vsyncpa [#allocation6 + $0x1], 1 }
 0x2ac   :  { %1408 = vsyncpa [#allocation4], 1 }
 0x2ad   :  { %1410 = vsyncpa [#allocation4 + $0x1], 1 }
 0x2ae   :  { %1411 = vsyncpa [#allocation9], 1 }
 0x2af   :  { %1413 = vsyncpa [#allocation9 + $0x1], 1 }

</bundles_post_ra>
